<compile_context>
chip_gen: v6e
topology: v6e:2x2x1
jax: 0.10.0
libtpu: 0.0.40
codegen_flags: <defaults>
</compile_context>

<pallas_src>
import functools

import jax
import jax.numpy as jnp
from jax.experimental import pallas as pl
from jax.experimental.pallas import tpu as pltpu

EPS = 1e-5

# Explicit scoped-VMEM limit, safe on v5e / v6e / v7x (v7x physical is 64 MiB).
_VMEM_LIMIT_BYTES = 32 * 1024 * 1024
# Per x-tile budget; ~4 tiles in flight (in + out, each double-buffered).
_TILE_BUDGET_BYTES = 6 * 1024 * 1024


# ----------------------------- kernels -------------------------------------


def _revin_norm_kernel(x_ref, w_ref, b_ref, y_ref, mean_ref, std_ref, *, eps):
    # x_ref: (Bt, L, C) block; reduce over axis=1 (sequence) per (batch, chan).
    x = x_ref[...].astype(jnp.float32)
    inv_l = jnp.float32(1.0 / x.shape[1])

    # Single pass over the tile: sum and sum-of-squares (f32 accumulation).
    s1 = jnp.sum(x, axis=1, keepdims=True)               # (Bt, 1, C)
    s2 = jnp.sum(x * x, axis=1, keepdims=True)           # (Bt, 1, C)
    mean = s1 * inv_l
    # biased variance (unbiased=False), clamp tiny negative rounding residue.
    var = jnp.maximum(s2 * inv_l - mean * mean, 0.0)
    inv_std = jax.lax.rsqrt(var + eps)                    # EUP, per-channel
    std = jnp.sqrt(var + eps)

    w = w_ref[...].astype(jnp.float32)                    # (1, C) -> broadcasts
    b = b_ref[...].astype(jnp.float32)

    # Fold normalize + affine into one multiply-add sweep over the tile:
    #   y = (x - mean) * inv_std * w + b  ==  x * scale + shift
    scale = w * inv_std                                   # (Bt, 1, C)
    shift = b - mean * scale                              # (Bt, 1, C)
    y_ref[...] = (x * scale + shift).astype(y_ref.dtype)

    mean_ref[...] = mean.astype(mean_ref.dtype)
    std_ref[...] = std.astype(std_ref.dtype)


def _revin_denorm_kernel(x_ref, mean_ref, std_ref, w_ref, b_ref, y_ref, *, eps):
    x = x_ref[...].astype(jnp.float32)
    mean = mean_ref[...].astype(jnp.float32)              # (Bt, 1, C)
    std = std_ref[...].astype(jnp.float32)                # (Bt, 1, C)
    w = w_ref[...].astype(jnp.float32)                    # (1, C)
    b = b_ref[...].astype(jnp.float32)                    # (1, C)

    # y = (x - b) / (w + eps^2) * std + mean  ==  x * scale + shift
    # (identical semantics to torch RevIN; still blows up if w ~ -eps^2)
    inv_w = pl.reciprocal(w + eps * eps, approx=False)    # per-channel only
    scale = std * inv_w                                   # (Bt, 1, C)
    shift = mean - b * scale                              # (Bt, 1, C)
    y_ref[...] = (x * scale + shift).astype(y_ref.dtype)


# ----------------------------- wrappers ------------------------------------


def _choose_block_b(B, L, C, itemsize):
    """Largest divisor of B fitting the VMEM tile budget, keeping >=2 blocks."""
    per_batch = max(1, L * C * itemsize)
    max_bt = max(1, _TILE_BUDGET_BYTES // per_batch)
    if B >= 2:
        # keep at least 2 grid blocks so both v7x TensorCores get work
        max_bt = max(1, min(max_bt, B // 2))
    bt = 1
    for cand in range(1, B + 1):
        if B % cand == 0 and cand <= max_bt:
            bt = cand
    return bt


def revin_norm(x, weight, bias, *, eps=EPS):
    """mode='norm': returns (normalized_x, mean, stdev)."""
    B, L, C = x.shape
    w2 = weight.reshape(1, C)
    b2 = bias.reshape(1, C)
    bt = _choose_block_b(B, L, C, jnp.dtype(x.dtype).itemsize)
    grid = (B // bt,)

    kernel = functools.partial(_revin_norm_kernel, eps=eps)
    y, mean, std = pl.pallas_call(
        kernel,
        out_shape=(
            jax.ShapeDtypeStruct((B, L, C), x.dtype),     # keep model dtype
            jax.ShapeDtypeStruct((B, 1, C), jnp.float32),
            jax.ShapeDtypeStruct((B, 1, C), jnp.float32),
        ),
        grid_spec=pltpu.PrefetchScalarGridSpec(
            num_scalar_prefetch=0,
            grid=grid,
            in_specs=[
                pl.BlockSpec((bt, L, C), lambda i: (i, 0, 0)),
                pl.BlockSpec((1, C), lambda i: (0, 0)),
                pl.BlockSpec((1, C), lambda i: (0, 0)),
            ],
            out_specs=[
                pl.BlockSpec((bt, L, C), lambda i: (i, 0, 0)),
                pl.BlockSpec((bt, 1, C), lambda i: (i, 0, 0)),
                pl.BlockSpec((bt, 1, C), lambda i: (i, 0, 0)),
            ],
        ),
        compiler_params=pltpu.CompilerParams(
            dimension_semantics=("parallel",),
            vmem_limit_bytes=_VMEM_LIMIT_BYTES),
    )(x, w2, b2)
    return y, mean, std


def revin_denorm(x, mean, std, weight, bias, *, eps=EPS):
    """mode='denorm': inverse transform using stats from the 'norm' pass."""
    B, L, C = x.shape
    w2 = weight.reshape(1, C)
    b2 = bias.reshape(1, C)
    bt = _choose_block_b(B, L, C, jnp.dtype(x.dtype).itemsize)
    grid = (B // bt,)

    kernel = functools.partial(_revin_denorm_kernel, eps=eps)
    y = pl.pallas_call(
        kernel,
        out_shape=jax.ShapeDtypeStruct((B, L, C), x.dtype),
        grid_spec=pltpu.PrefetchScalarGridSpec(
            num_scalar_prefetch=0,
            grid=grid,
            in_specs=[
                pl.BlockSpec((bt, L, C), lambda i: (i, 0, 0)),
                pl.BlockSpec((bt, 1, C), lambda i: (i, 0, 0)),
                pl.BlockSpec((bt, 1, C), lambda i: (i, 0, 0)),
                pl.BlockSpec((1, C), lambda i: (0, 0)),
                pl.BlockSpec((1, C), lambda i: (0, 0)),
            ],
            out_specs=pl.BlockSpec((bt, L, C), lambda i: (i, 0, 0)),
        ),
        compiler_params=pltpu.CompilerParams(
            dimension_semantics=("parallel",),
            vmem_limit_bytes=_VMEM_LIMIT_BYTES),
    )(x, mean, std, w2, b2)
    return y


# ------------------------- pure-JAX reference -------------------------------


def revin_norm_ref(x, weight, bias, eps=EPS):
    mean = jnp.mean(x, axis=1, keepdims=True)
    var = jnp.mean((x - mean) ** 2, axis=1, keepdims=True)
    std = jnp.sqrt(var + eps)
    y = (x - mean) / std * weight + bias
    return y, mean, std


def revin_denorm_ref(x, mean, std, weight, bias, eps=EPS):
    y = (x - bias) / (weight + eps * eps)
    return y * std + mean


# --------------------------------- main -------------------------------------

if __name__ == "__main__":
    B, L, C = 4, 32, 8  # batch, seq_len, num_features (small; exercises Bt=2)

    key = jax.random.PRNGKey(0)
    kx, kw, kb = jax.random.split(key, 3)
    x = jax.random.normal(kx, (B, L, C), dtype=jnp.float32) * 3.0 + 1.5

    # RevIN._init_params gives ones/zeros; perturb deterministically so the
    # affine scale/shift fold is actually exercised.
    weight = 1.0 + 0.25 * jax.random.uniform(kw, (C,), dtype=jnp.float32)
    bias = 0.1 * jax.random.normal(kb, (C,), dtype=jnp.float32)

    # mode = 'norm'
    y, mean, std = revin_norm(x, weight, bias)
    jax.block_until_ready(y)

    # mode = 'denorm' (uses stats stored from the 'norm' pass)
    x_rec = revin_denorm(y, mean, std, weight, bias)
    jax.block_until_ready(x_rec)

    # check against pure-JAX reference
    y_ref, mean_r, std_r = revin_norm_ref(x, weight, bias)
    x_rec_ref = revin_denorm_ref(y_ref, mean_r, std_r, weight, bias)

    assert jnp.allclose(y, y_ref, atol=1e-4, rtol=1e-4)
    assert jnp.allclose(mean, mean_r, atol=1e-4, rtol=1e-4)
    assert jnp.allclose(std, std_r, atol=1e-4, rtol=1e-4)
    assert jnp.allclose(x_rec, x_rec_ref, atol=1e-4, rtol=1e-4)
    # round-trip should approximately recover x
    assert jnp.allclose(x_rec, x, atol=1e-3, rtol=1e-3)

    print("KERNEL_OK")
</pallas_src>

<mosaic_0001>
module attributes {stable_mosaic.version = 11 : i64} {
  func.func @_revin_norm_kernel(%arg0: i32, %arg1: memref<2x32x8xf32, #tpu.memory_space<vmem>>, %arg2: memref<1x8xf32, #tpu.memory_space<vmem>>, %arg3: memref<1x8xf32, #tpu.memory_space<vmem>>, %arg4: memref<2x32x8xf32, #tpu.memory_space<vmem>>, %arg5: memref<2x1x8xf32, #tpu.memory_space<vmem>>, %arg6: memref<2x1x8xf32, #tpu.memory_space<vmem>>) attributes {dimension_semantics = [#tpu.dimension_semantics<parallel>], iteration_bounds = array<i64: 2>, scalar_prefetch = 0 : i64, scratch_operands = 0 : i64, tpu.core_type = #tpu.core_type<tc>, window_params = [{transform_indices = @transform_0, window_bounds = array<i64: 2, 32, 8>}, {pipeline_mode = #tpu.pipeline_mode<synchronous>, transform_indices = @transform_1, window_bounds = array<i64: 1, 8>}, {pipeline_mode = #tpu.pipeline_mode<synchronous>, transform_indices = @transform_2, window_bounds = array<i64: 1, 8>}, {transform_indices = @transform_3, window_bounds = array<i64: 2, 32, 8>}, {transform_indices = @transform_4, window_bounds = array<i64: 2, 1, 8>}, {transform_indices = @transform_5, window_bounds = array<i64: 2, 1, 8>}]} {
    %c0 = arith.constant 0 : index
    %c0_0 = arith.constant 0 : index
    %c0_1 = arith.constant 0 : index
    %0 = vector.load %arg1[%c0, %c0_0, %c0_1] : memref<2x32x8xf32, #tpu.memory_space<vmem>>, vector<2x32x8xf32>
    %cst = arith.constant dense<0.000000e+00> : vector<2x8xf32>
    %1 = vector.multi_reduction <add>, %0, %cst [1] : vector<2x32x8xf32> to vector<2x8xf32>
    %2 = vector.shape_cast %1 : vector<2x8xf32> to vector<2x1x8xf32>
    %3 = arith.mulf %0, %0 : vector<2x32x8xf32>
    %cst_2 = arith.constant dense<0.000000e+00> : vector<2x8xf32>
    %4 = vector.multi_reduction <add>, %3, %cst_2 [1] : vector<2x32x8xf32> to vector<2x8xf32>
    %5 = vector.shape_cast %4 : vector<2x8xf32> to vector<2x1x8xf32>
    %cst_3 = arith.constant 3.125000e-02 : f32
    %6 = vector.broadcast %cst_3 : f32 to vector<2x1x8xf32>
    %7 = arith.mulf %2, %6 : vector<2x1x8xf32>
    %cst_4 = arith.constant 3.125000e-02 : f32
    %8 = vector.broadcast %cst_4 : f32 to vector<2x1x8xf32>
    %9 = arith.mulf %5, %8 : vector<2x1x8xf32>
    %10 = arith.mulf %7, %7 : vector<2x1x8xf32>
    %11 = arith.subf %9, %10 : vector<2x1x8xf32>
    %cst_5 = arith.constant 0.000000e+00 : f32
    %12 = vector.broadcast %cst_5 : f32 to vector<2x1x8xf32>
    %13 = arith.maximumf %11, %12 : vector<2x1x8xf32>
    %cst_6 = arith.constant 9.99999974E-6 : f32
    %14 = vector.broadcast %cst_6 : f32 to vector<2x1x8xf32>
    %15 = arith.addf %13, %14 : vector<2x1x8xf32>
    %16 = math.rsqrt %15 : vector<2x1x8xf32>
    %cst_7 = arith.constant 9.99999974E-6 : f32
    %17 = vector.broadcast %cst_7 : f32 to vector<2x1x8xf32>
    %18 = arith.addf %13, %17 : vector<2x1x8xf32>
    %19 = math.sqrt %18 : vector<2x1x8xf32>
    %c0_8 = arith.constant 0 : index
    %c0_9 = arith.constant 0 : index
    %20 = vector.load %arg2[%c0_8, %c0_9] : memref<1x8xf32, #tpu.memory_space<vmem>>, vector<1x8xf32>
    %c0_10 = arith.constant 0 : index
    %c0_11 = arith.constant 0 : index
    %21 = vector.load %arg3[%c0_10, %c0_11] : memref<1x8xf32, #tpu.memory_space<vmem>>, vector<1x8xf32>
    %22 = vector.shape_cast %20 : vector<1x8xf32> to vector<1x1x8xf32>
    %23 = vector.broadcast %22 : vector<1x1x8xf32> to vector<2x1x8xf32>
    %24 = arith.mulf %23, %16 : vector<2x1x8xf32>
    %25 = arith.mulf %7, %24 : vector<2x1x8xf32>
    %26 = vector.shape_cast %21 : vector<1x8xf32> to vector<1x1x8xf32>
    %27 = vector.broadcast %26 : vector<1x1x8xf32> to vector<2x1x8xf32>
    %28 = arith.subf %27, %25 : vector<2x1x8xf32>
    %29 = vector.broadcast %24 : vector<2x1x8xf32> to vector<2x32x8xf32>
    %30 = arith.mulf %0, %29 : vector<2x32x8xf32>
    %31 = vector.broadcast %28 : vector<2x1x8xf32> to vector<2x32x8xf32>
    %32 = arith.addf %30, %31 : vector<2x32x8xf32>
    %c0_12 = arith.constant 0 : index
    %c0_13 = arith.constant 0 : index
    %c0_14 = arith.constant 0 : index
    %33 = vector.load %arg4[%c0_12, %c0_13, %c0_14] : memref<2x32x8xf32, #tpu.memory_space<vmem>>, vector<2x32x8xf32>
    tpu.vector_store %arg4[%c0_12, %c0_13, %c0_14], %32 {strides = array<i32>} : memref<2x32x8xf32, #tpu.memory_space<vmem>>, vector<2x32x8xf32>,
    %c0_15 = arith.constant 0 : index
    %c0_16 = arith.constant 0 : index
    %c0_17 = arith.constant 0 : index
    %34 = vector.load %arg5[%c0_15, %c0_16, %c0_17] : memref<2x1x8xf32, #tpu.memory_space<vmem>>, vector<2x1x8xf32>
    tpu.vector_store %arg5[%c0_15, %c0_16, %c0_17], %7 {strides = array<i32>} : memref<2x1x8xf32, #tpu.memory_space<vmem>>, vector<2x1x8xf32>,
    %c0_18 = arith.constant 0 : index
    %c0_19 = arith.constant 0 : index
    %c0_20 = arith.constant 0 : index
    %35 = vector.load %arg6[%c0_18, %c0_19, %c0_20] : memref<2x1x8xf32, #tpu.memory_space<vmem>>, vector<2x1x8xf32>
    tpu.vector_store %arg6[%c0_18, %c0_19, %c0_20], %19 {strides = array<i32>} : memref<2x1x8xf32, #tpu.memory_space<vmem>>, vector<2x1x8xf32>,
    return
  }
  func.func @transform_0(%arg0: i32) -> (i32, i32, i32) {
    %c0_i32 = arith.constant 0 : i32
    %c0_i32_0 = arith.constant 0 : i32
    %c0_i32_1 = arith.constant 0 : i32
    return %arg0, %c0_i32, %c0_i32_0 : i32, i32, i32
  }
  func.func @transform_1(%arg0: i32) -> (i32, i32) {
    %c0_i32 = arith.constant 0 : i32
    %c0_i32_0 = arith.constant 0 : i32
    %c0_i32_1 = arith.constant 0 : i32
    return %c0_i32, %c0_i32_0 : i32, i32
  }
  func.func @transform_2(%arg0: i32) -> (i32, i32) {
    %c0_i32 = arith.constant 0 : i32
    %c0_i32_0 = arith.constant 0 : i32
    %c0_i32_1 = arith.constant 0 : i32
    return %c0_i32, %c0_i32_0 : i32, i32
  }
  func.func @transform_3(%arg0: i32) -> (i32, i32, i32) {
    %c0_i32 = arith.constant 0 : i32
    %c0_i32_0 = arith.constant 0 : i32
    %c0_i32_1 = arith.constant 0 : i32
    return %arg0, %c0_i32, %c0_i32_0 : i32, i32, i32
  }
  func.func @transform_4(%arg0: i32) -> (i32, i32, i32) {
    %c0_i32 = arith.constant 0 : i32
    %c0_i32_0 = arith.constant 0 : i32
    %c0_i32_1 = arith.constant 0 : i32
    return %arg0, %c0_i32, %c0_i32_0 : i32, i32, i32
  }
  func.func @transform_5(%arg0: i32) -> (i32, i32, i32) {
    %c0_i32 = arith.constant 0 : i32
    %c0_i32_0 = arith.constant 0 : i32
    %c0_i32_1 = arith.constant 0 : i32
    return %arg0, %c0_i32, %c0_i32_0 : i32, i32, i32
  }
}

</mosaic_0001>

<bundles_post_ra>
// kernel: tpu_custom_call.1
= control target key start
LH: loop header
LB: loop body
LE: loop exit
PB: predicated region body
PF: predicated region fallthrough
CT: control target
= control target key end

     0   :  { %11 = vsyncpa [#allocation3], 0  ;;  %s1034_s0 = inlined_call_operand.vmem [shape: f32[4,32,8], index: 0, kind: input, shape index: {}]   ;;  %s1035_s1 = inlined_call_operand.vmem [shape: f32[1,8], index: 1, kind: input, shape index: {}]   ;;  %s1036_s2 = inlined_call_operand.vmem [shape: f32[1,8], index: 2, kind: input, shape index: {}]   ;;  %s1037_s3 = inlined_call_operand.vmem [shape: f32[4,32,8], index: 3, kind: output, shape index: {0}]   ;;  %s1038_s4 = inlined_call_operand.hbm [shape: f32[4,1,8], index: 4, kind: output, shape index: {1}]   ;;  %s1039_s5 = inlined_call_operand.hbm [shape: f32[4,1,8], index: 5, kind: output, shape index: {2}]  }
   0x1   :  { %13 = vsyncpa [#allocation3 + $0x1], 0 }
   0x2   :  { %14 = vsyncpa [#allocation5], 0 }
   0x3   :  { %16 = vsyncpa [#allocation5 + $0x1], 0  ;;  %s779_s18 = smov 0   ;;  %s781_s19 = smov 0  }
   0x4   :  { %s783_s20 = smov 0   ;;  %s785_s21 = smov 0  }
   0x5 LB: > { %s800_s22 = sadd.s32 4294967295, %s743_s21   ;;  %s579_s23 = sadd.s32 4294967294, %s743_s21   ;;  %s743_s21 = sphi %s785_s21, %s1047_s21   ;;  %s739_s20 = sphi %s783_s20, %s1046_s20   ;;  %s735_s19 = sphi %s781_s19, %s1045_s19   ;;  %s731_s18 = sphi %s779_s18, %s1044_s18  }
   0x6   : > { %s804_s24 = sadd.s32 1, %s743_s21   ;;  %s123_s25 = sadd.s32 1, %s739_s20 }
   0x7   : > { %s120_s26 = ssub.s32 %s743_s21, %s804_s24  ;;  %p133_p0 = scmp.ne.s32.totalorder %s739_s20, %s735_s19 }
   0x8   : > { %p121_p1 = scmp.eq.s32.totalorder %s120_s26, 0  ;;  %p134_p2 = scmp.eq.s32.totalorder %s800_s22, 1 }
   0x9   : > { %p139_p3 = scmp.ne.s32.totalorder %s735_s19, %s731_s18  ;;  %p140_p4 = scmp.eq.s32.totalorder %s579_s23, 1 }
   0xa   : > { %s815_s27 = scalar_select %p121_p1, %s739_s20, %s123_s25  }
   0xb   : > { %p817_p5 = por %p134_p2, %p133_p0  ;;  %p821_p6 = por %p140_p4, %p139_p3 }
   0xc   : > { %p582_p7 = scmp.ge.s32.totalorder %s743_s21, 1  ;;  %p200_p8 = scmp.lt.s32.totalorder %s743_s21, 3 }
   0xe   : > { %p201_p9 = pnand %p582_p7, %p200_p8 }
   0xf   : > { %s585_s30 = sshll.u32 (!%p201_p9), %s800_s22, 1  ;;  %s891_s10 = sand.u32 (!%p201_p9), 1, %s735_s19  }
  0x10   : > { %204 = sbr.rel (%p201_p9) target bundleno = 107 (0x6b), region = 32  ;;  %p241_p10 = scmp.lt.s32.totalorder (!%p201_p9), %s585_s30, 3 }
  0x11   : > { %s583_s11 = sshll.u32 (!%p201_p9), %s891_s10, 1  ;;  %s1040_s14 = sshll.u32 (!%p201_p9), %s800_s22, 5 }
  0x12   : > { %s232_s12 = scalar_lea.vmem (!%p201_p9), [#allocation2], %s583_s11  ;;  %s906_s17 = scalar_lea.hbm (!%p201_p9), %s1038_s4, %s1040_s14 }
  0x13   : > { %s443_s13 = sshll.u32 (!%p201_p9), %s232_s12, 4  ;;  %s421_s23 = scalar_lea.sflag (!%p201_p9), [#allocation3], %s891_s10  ;;  %s899_s13 = int_to_ptr.vmem [resolvable:$true] %s443_s13 }
  0x14   : > { %s653_s25 = scalar_lea.vmem (!%p201_p9), %s899_s13, 32  ;;  %s745_s26 = smov (!%p201_p9), [#allocation2]  }
  0x15   : > { %s1049_s30 = smov (!%p241_p10, %s585_s30), 3  ;;  %vm264_vm0 = vcmask 64512   ;;  %vm409_vm1 = vcmask 57344   ;;  %p654_p11 = scmp.ne.s32.totalorder %s899_s13, %s653_s25 }
  0x16   : > { %s599_s6 = sshll.u32 %s1049_s30, 5  ;;  %s657_s7 = sshll.u32 %s745_s26, 4  ;;  %s658_s7 = int_to_ptr.vmem [resolvable:$false] %s657_s7 }
  0x17   : > { %s245_s9 = scalar_lea.vmem %s1034_s0, %s599_s6  ;;  %p655_p12 = pnand %p654_p11, %p817_p5 }
  0x18   : > { %v836_v0 = vld [vmem:[%s245_s9] sm:$0xff]  ;;  %v838_v1 = vld [vmem:[%s245_s9 + $0x8] sm:$0xff]  ;;  %v840_v2 = vld [vmem:[%s245_s9 + $0x10] sm:$0xff]  ;;  %s659_s8 = scalar_lea.vmem %s658_s7, 64  ;;  %p660_p0 = scmp.lt.s32.totalorder %s899_s13, %s658_s7 }
  0x19   : > { %v842_v3 = vld [vmem:[%s245_s9 + $0x18] sm:$0xff]  ;;  %v265_v4 = vsel %vm264_vm0, %v836_v0, 0.0  ;;  %v266_v5 = vsel %vm264_vm0, %v838_v1, 0.0  ;;  %v268_v6 = vsel %vm264_vm0, %v840_v2, 0.0  ;;  %v291_v7 = vmul.f32 %v836_v0, %v836_v0  ;;  %v852_v8 = vld [vmem:[%s245_s9 + $0x20] sm:$0xff]  ;;  %v854_v9 = vld [vmem:[%s245_s9 + $0x28] sm:$0xff]  ;;  %p656_p13 = pneg %p655_p12  ;;  %p661_p1 = scmp.lt.s32.totalorder %s659_s8, %s653_s25 }
  0x1a   : > { %v267_v10 = vadd.f32 %v266_v5, %v265_v4  ;;  %v270_v11 = vsel %vm264_vm0, %v842_v3, 0.0  ;;  %v292_v12 = vmul.f32 %v838_v1, %v838_v1  ;;  %v293_v13 = vmul.f32 %v840_v2, %v840_v2  ;;  %v862_v14 = vld [vmem:[%s245_s9 + $0x30] sm:$0xff]  ;;  %v864_v15 = vld [vmem:[%s245_s9 + $0x38] sm:$0xff] }
  0x1b   : > { %v294_v16 = vmul.f32 %v842_v3, %v842_v3  ;;  %v299_v17 = vsel %vm264_vm0, %v291_v7, 0.0  ;;  %v278_v18 = vsel %vm264_vm0, %v852_v8, 0.0  ;;  %v279_v19 = vsel %vm264_vm0, %v854_v9, 0.0  ;;  %p662_p2 = por %p661_p1, %p660_p0 }
  0x1c   : > { %v269_v20 = vadd.f32 %v268_v6, %v267_v10  ;;  %v300_v21 = vsel %vm264_vm0, %v292_v12, 0.0  ;;  %v302_v22 = vsel %vm264_vm0, %v293_v13, 0.0  ;;  %v280_v23 = vadd.f32 %v279_v19, %v278_v18 }
  0x1d   : > { %v301_v24 = vadd.f32 %v300_v21, %v299_v17  ;;  %v304_v25 = vsel %vm264_vm0, %v294_v16, 0.0  ;;  %v281_v26 = vsel %vm264_vm0, %v862_v14, 0.0  ;;  %v283_v27 = vsel %vm264_vm0, %v864_v15, 0.0  ;;  %p663_p3 = pnand %p662_p2, %p656_p13 }
  0x1e   : > { %v271_v28 = vadd.f32 %v270_v11, %v269_v20  ;;  %v282_v29 = vadd.f32 %v281_v26, %v280_v23  ;;  %v295_v30 = vmul.f32 %v852_v8, %v852_v8  ;;  %v296_v31 = vmul.f32 %v854_v9, %v854_v9 }
  0x1f   : > { %v303_v32 = vadd.f32 %v302_v22, %v301_v24  ;;  %v297_v33 = vmul.f32 %v862_v14, %v862_v14  ;;  %v298_v34 = vmul.f32 %v864_v15, %v864_v15 }
  0x20   : > { %v272_v35 = vrot.slane %v271_v28, 4  ;;  %v284_v36 = vadd.f32 %v283_v27, %v282_v29  ;;  %v312_v37 = vsel %vm264_vm0, %v295_v30, 0.0  ;;  %v313_v38 = vsel %vm264_vm0, %v296_v31, 0.0 }
  0x21   : > { %v305_v39 = vadd.f32 %v304_v25, %v303_v32  ;;  %v314_v40 = vadd.f32 %v313_v38, %v312_v37  ;;  %v315_v41 = vsel %vm264_vm0, %v297_v33, 0.0  ;;  %v317_v44 = vsel %vm264_vm0, %v298_v34, 0.0 }
  0x22   : > { %v273_v42 = vadd.f32 %v272_v35, %v271_v28  ;;  %v285_v43 = vrot.slane %v284_v36, 4 }
  0x23   : > { %v306_v45 = vrot.slane %v305_v39, 4  ;;  %v316_v46 = vadd.f32 %v315_v41, %v314_v40 }
  0x24   : > { %v274_v47 = vrot.slane %v273_v42, 2  ;;  %v286_v48 = vadd.f32 %v285_v43, %v284_v36 }
  0x25   : > { %v307_v49 = vadd.f32 %v306_v45, %v305_v39  ;;  %v318_v50 = vadd.f32 %v317_v44, %v316_v46 }
  0x26   : > { %v275_v51 = vadd.f32 %v274_v47, %v273_v42  ;;  %v287_v52 = vrot.slane %v286_v48, 2 }
  0x27   : > { %v308_v53 = vrot.slane %v307_v49, 2  ;;  %v319_v54 = vrot.slane %v318_v50, 4 }
  0x28   : > { %v276_v55 = vrot.slane %v275_v51, 1  ;;  %v288_v56 = vadd.f32 %v287_v52, %v286_v48 }
  0x29   : > { %v309_v57 = vadd.f32 %v308_v53, %v307_v49  ;;  %v320_v58 = vadd.f32 %v319_v54, %v318_v50 }
  0x2a   : > { %v277_v59 = vadd.f32 %v276_v55, %v275_v51  ;;  %v289_v60 = vrot.slane %v288_v56, 1 }
  0x2b   : > { %v310_v61 = vrot.slane %v309_v57, 1  ;;  %v321_v62 = vrot.slane %v320_v58, 2 }
  0x2c   : > { %v325_v63 = vmul.f32 0.03125, %v277_v59  ;;  %v290_v4 = vadd.f32 %v289_v60, %v288_v56 }
  0x2d   : > { %v311_v5 = vadd.f32 %v310_v61, %v309_v57  ;;  %v322_v6 = vadd.f32 %v321_v62, %v320_v58 }
  0x2e   : > { %v329_v7 = vmul.f32 %v325_v63, %v325_v63  ;;  %410 = vst.msk [vmem:[%s232_s12] sm:$0x1] %vm409_vm1, %v325_v63  ;;  %v909_v10 = vmul.f32 0.03125, %v290_v4 }
  0x2f   : > { %v327_v11 = vmul.f32 0.03125, %v311_v5  ;;  %v323_v12 = vrot.slane %v322_v6, 1 }
  0x30   : > { %411 = vst.msk [vmem:[%s232_s12 + $0x1] sm:$0x1] %vm409_vm1, %v909_v10  ;;  %v330_v17 = vmul.f32 %v909_v10, %v909_v10 }
  0x31   : > { %v331_v13 = vsub.f32 %v327_v11, %v329_v7  ;;  %v324_v16 = vadd.f32 %v323_v12, %v322_v6 }
  0x32   : > { %666 = shalt.err (!%p663_p3)
}
  0x33   : > { %s667_s9 = scalar_lea.hbm %s906_s17, 32  ;;  %s671_s16 = scalar_lea.hbm %s1038_s4, 64 }
  0x34   : > { %p668_p4 = scmp.ne.s32.totalorder %s906_s17, %s667_s9  ;;  %p672_p9 = scmp.lt.s32.totalorder %s906_s17, %s1038_s4 }
  0x35   : > { %p673_p10 = scmp.lt.s32.totalorder %s671_s16, %s667_s9 }
  0x36   : > { %p669_p7 = pnand %p668_p4, %p817_p5 }
  0x37   : > { %p674_p11 = por %p673_p10, %p672_p9 }
  0x38   : > { %p670_p8 = pneg %p669_p7 }
  0x3a   : > { %p675_p12 = pnand %p674_p11, %p670_p8 }
  0x3c   : > { %678 = shalt.err (!%p675_p12)
}
  0x3d   : > { %s746_s25 = smov 16   ;;  %s747_s7 = smov 1   ;;  %v333_v18 = vmax.f32 %v331_v13, 0.0  ;;  %v328_v19 = vmul.f32 0.03125, %v324_v16  ;;  %v363_v24 = vlaneseq  ;;  %v353_v26 = vld [vmem:[%s1035_s1] sm:$0x1] }
  0x3e   : > { %603 = dma.vmem_to_hbm [thread:$0]  (%p817_p5), %s899_s13, 32, %s906_s17, %s421_s23, %s746_s25, %s746_s25, %s747_s7  }
  0x3f   : > { %v335_v20 = vadd.f32 1e-05, %v333_v18  ;;  %v332_v21 = vsub.f32 %v328_v19, %v330_v17  ;;  %v364_v25 = vshrl.u32 %v363_v24, 7  ;;  %v354_v32 = vld [vmem:[%s1036_s2] sm:$0x1]  ;;  %s239_s23 = scalar_lea.vmem [#allocation4], %s583_s11  ;;  %s959_s16 = scalar_lea.vmem %s1037_s3, %s599_s6 }
  0x40   : > { %s459_s9 = sshll.u32 %s239_s23, 4  ;;  %s1043_s30 = sshll.u32 %s800_s22, 5  ;;  %s963_s9 = int_to_ptr.vmem [resolvable:$true] %s459_s9 }
  0x41   : > { %649 = vrsqrt.f32 %v335_v20  ;;  %v334_v22 = vmax.f32 %v332_v21, 0.0  ;;  %v365_v27 = vsub.s32 0, %v364_v25  ;;  %vm341_vm2 = vcmp.eq.f32.partialorder %v335_v20, inf  ;;  %s970_s26 = scalar_lea.hbm %s1039_s5, %s1043_s30  ;;  %s426_s22 = scalar_lea.sflag [#allocation5], %s891_s10 }
  0x42   : > { %v344_v29 = vand.u32 2147483648, %v335_v20  ;;  %vm343_vm3 = vcmp.eq.f32.partialorder %v335_v20, 0.0  ;;  %s679_s14 = scalar_lea.vmem %s963_s9, 32  ;;  %s748_s8 = smov [#allocation4]  }
  0x43   : > { %v336_v23 = vadd.f32 1e-05, %v334_v22  ;;  %p680_p13 = scmp.ne.s32.totalorder %s963_s9, %s679_s14  ;;  %s683_s13 = sshll.u32 %s748_s8, 4  ;;  %s684_s13 = int_to_ptr.vmem [resolvable:$false] %s683_s13 }
  0x44   : > { %s685_s17 = scalar_lea.vmem %s684_s13, 64  ;;  %p686_p2 = scmp.lt.s32.totalorder %s963_s9, %s684_s13 }
  0x45   : > { %651 = vrsqrt.f32 %v336_v23  ;;  %vm348_vm4 = vcmp.eq.f32.partialorder %v336_v23, inf  ;;  %v351_v45 = vand.u32 2147483648, %v336_v23  ;;  %vm350_vm5 = vcmp.eq.f32.partialorder %v336_v23, 0.0  ;;  %p681_p0 = pnand %p680_p13, %p817_p5  ;;  %p687_p3 = scmp.lt.s32.totalorder %s685_s17, %s679_s14 }
  0x47   : > { %p682_p1 = pneg %p681_p0  ;;  %p688_p4 = por %p687_p3, %p686_p2 }
  0x49   : > { %p689_p7 = pnand %p688_p4, %p682_p1 }
  0x4e   : > { %v650_v28 = vpop.eup %649 }
  0x4f   : > { %v355_v30 = vmul.f32 %v650_v28, %v353_v26  ;;  %v340_v31 = vmul.f32 %v650_v28, %v335_v20 }
  0x51   : > { %v357_v33 = vmul.f32 %v355_v30, %v325_v63  ;;  %v366_v34 = vrot.slane %v355_v30, %v365_v27  ;;  %v342_v35 = vsel %vm341_vm2, %v335_v20, %v340_v31 }
  0x52   : > { %v652_v36 = vpop.eup %651  ;;  %v345_v37 = vsel %vm343_vm3, %v344_v29, %v342_v35 }
  0x53   : > { %v359_v38 = vsub.f32 %v354_v32, %v357_v33  ;;  %v373_v39 = vmul.f32 %v366_v34, %v836_v0  ;;  %v374_v40 = vmul.f32 %v366_v34, %v838_v1  ;;  %v375_v41 = vmul.f32 %v366_v34, %v840_v2  ;;  %412 = vst.msk [vmem:[%s239_s23] sm:$0x1] %vm409_vm1, %v345_v37 }
  0x54   : > { %v376_v42 = vmul.f32 %v366_v34, %v842_v3  ;;  %v356_v43 = vmul.f32 %v652_v36, %v353_v26  ;;  %v347_v44 = vmul.f32 %v652_v36, %v336_v23 }
  0x55   : > { %v386_v46 = vrot.slane %v359_v38, %v365_v27 }
  0x56   : > { %v358_v0 = vmul.f32 %v356_v43, %v909_v10  ;;  %v370_v1 = vrot.slane %v356_v43, %v365_v27  ;;  %v349_v2 = vsel %vm348_vm4, %v336_v23, %v347_v44 }
  0x57   : > { %v393_v3 = vadd.f32 %v386_v46, %v373_v39  ;;  %v394_v47 = vadd.f32 %v386_v46, %v374_v40  ;;  %v395_v48 = vadd.f32 %v386_v46, %v375_v41  ;;  %v396_v49 = vadd.f32 %v386_v46, %v376_v42 }
  0x58   : > { %v360_v50 = vsub.f32 %v354_v32, %v358_v0  ;;  %v352_v51 = vsel %vm350_vm5, %v351_v45, %v349_v2  ;;  %v377_v52 = vmul.f32 %v370_v1, %v852_v8  ;;  %v378_v53 = vmul.f32 %v370_v1, %v854_v9 }
  0x59   : > { %401 = vst.msk [vmem:[%s959_s16] sm:$0xff] %vm264_vm0, %v393_v3  ;;  %402 = vst.msk [vmem:[%s959_s16 + $0x8] sm:$0xff] %vm264_vm0, %v394_v47  ;;  %v379_v54 = vmul.f32 %v370_v1, %v862_v14  ;;  %v380_v55 = vmul.f32 %v370_v1, %v864_v15 }
  0x5a   : > { %403 = vst.msk [vmem:[%s959_s16 + $0x10] sm:$0xff] %vm264_vm0, %v395_v48  ;;  %404 = vst.msk [vmem:[%s959_s16 + $0x18] sm:$0xff] %vm264_vm0, %v396_v49  ;;  %v390_v56 = vrot.slane %v360_v50, %v365_v27 }
  0x5b   : > { %413 = vst.msk [vmem:[%s239_s23 + $0x1] sm:$0x1] %vm409_vm1, %v352_v51 }
  0x5c   : > { %692 = shalt.err (!%p689_p7)
}
  0x5d   : > { %s693_s23 = scalar_lea.hbm %s970_s26, 32  ;;  %s697_s15 = scalar_lea.hbm %s1039_s5, 64 }
  0x5e   : > { %p694_p8 = scmp.ne.s32.totalorder %s970_s26, %s693_s23  ;;  %p698_p11 = scmp.lt.s32.totalorder %s970_s26, %s1039_s5 }
  0x5f   : > { %p699_p12 = scmp.lt.s32.totalorder %s697_s15, %s693_s23 }
  0x60   : > { %p695_p9 = pnand %p694_p8, %p817_p5 }
  0x61   : > { %p700_p13 = por %p699_p12, %p698_p11 }
  0x62   : > { %p696_p10 = pneg %p695_p9 }
  0x64   : > { %p701_p0 = pnand %p700_p13, %p696_p10 }
  0x66   : > { %704 = shalt.err (!%p701_p0)
}
  0x67   : > { %604 = dma.vmem_to_hbm [thread:$0]  (%p817_p5), %s963_s9, 32, %s970_s26, %s426_s22, %s746_s25, %s746_s25, %s747_s7   ;;  %v397_v8 = vadd.f32 %v390_v56, %v377_v52  ;;  %v398_v9 = vadd.f32 %v390_v56, %v378_v53  ;;  %v399_v14 = vadd.f32 %v390_v56, %v379_v54  ;;  %v400_v15 = vadd.f32 %v390_v56, %v380_v55 }
  0x69   : > { %405 = vst.msk [vmem:[%s959_s16 + $0x20] sm:$0xff] %vm264_vm0, %v397_v8  ;;  %406 = vst.msk [vmem:[%s959_s16 + $0x28] sm:$0xff] %vm264_vm0, %v398_v9 }
  0x6a   : > { %407 = vst.msk [vmem:[%s959_s16 + $0x30] sm:$0xff] %vm264_vm0, %v399_v14  ;;  %408 = vst.msk [vmem:[%s959_s16 + $0x38] sm:$0xff] %vm264_vm0, %v400_v15 }
  0x6b PF: > { %p614_p1 = scmp.ge.s32.totalorder %s743_s21, 2  ;;  %s483_s28 = sand.u32 1, %s731_s18  }
  0x6c   : > { %s484_s25 = scalar_lea.sflag [#allocation3], %s483_s28 }
  0x6d   : > { %p608_p5 = pnand %p614_p1, %p821_p6 }
  0x6f   : > { %p609_p2 = pneg %p608_p5 }
  0x71   : > { %722 = dma.done.wait (%p609_p2), %s484_s25, 32  }
  0x72   : > { %724 = vsyncadd (%p609_p2), %s484_s25, 4294967264  ;;  %s493_s7 = scalar_lea.sflag [#allocation5], %s483_s28 }
  0x73   : > { %726 = dma.done.wait (%p609_p2), %s493_s7, 32  }
  0x74   : > { %728 = vsyncadd (%p609_p2), %s493_s7, 4294967264  ;;  %p19_p3 = scmp.ge.s32.totalorder %s804_s24, 4   ;;  %s1044_s18 = smov %s735_s19 }
  0x75   : > { %s1045_s19 = smov %s739_s20  ;;  %s1046_s20 = smov %s815_s27 }
  0x76   : > { %s1047_s21 = smov %s804_s24  ;;  %21 = sbr.rel (!%p19_p3) target bundleno = 5 (0x5), region = 96 }
  0x7b   :  { %498 = vsyncpa [#allocation3], 1 }
  0x7c   :  { %500 = vsyncpa [#allocation3 + $0x1], 1 }
  0x7d   :  { %501 = vsyncpa [#allocation5], 1 }
  0x7e   :  { %503 = vsyncpa [#allocation5 + $0x1], 1 }

</bundles_post_ra>
